<compile_context>
chip_gen: v6e
topology: v6e:2x2x1
jax: 0.10.0
libtpu: 0.0.40
codegen_flags: <defaults>
</compile_context>

<pallas_src>
import jax
import jax.numpy as jnp
from jax.experimental import pallas as pl
from jax.experimental.pallas import tpu as pltpu


def _round_up(x, m):
    return (x + m - 1) // m * m


def _vmem_budget():
    """Per-generation VMEM budget + batch-tile cap.

    v5e/v6e have 128 MiB physical VMEM -> bigger tiles + ~96 MiB scoped budget.
    v7x has 64 MiB -> conservative 48 MiB budget and a 512-row tile cap.
    """
    try:
        vmem_bytes = pltpu.get_tpu_info().vmem_capacity_bytes
    except Exception:  # unknown chip / no query available: assume small VMEM
        vmem_bytes = 64 * 1024 * 1024
    if vmem_bytes >= 100 * 1024 * 1024:        # v5e / v6e (128 MiB)
        return 96 * 1024 * 1024, 1024
    return 48 * 1024 * 1024, 512               # v7x (64 MiB)


def _actor_kernel(obs_ref, w1_ref, b1_ref, w2_ref, b2_ref, w3_ref, b3_ref,
                  out_ref):
    # obs arrives as f32 (no wrapper pre-cast); cast to bf16 on the VPU here
    # so the MXU gets bf16 operands while HBM only ever streams obs once.
    x = obs_ref[...].astype(jnp.bfloat16)

    # layer 1: Linear(obs_dim, H) + ReLU  (f32 accumulate, f32 epilogue)
    h1 = jnp.dot(x, w1_ref[...], preferred_element_type=jnp.float32)
    h1 = jnp.maximum(h1 + b1_ref[...], 0.0)

    # layer 2: Linear(H, H) + ReLU
    h2 = jnp.dot(h1.astype(jnp.bfloat16), w2_ref[...],
                 preferred_element_type=jnp.float32)
    h2 = jnp.maximum(h2 + b2_ref[...], 0.0)

    # layer 3: Linear(H, A_pad) -> lane-dense padded logits (no activation)
    o = jnp.dot(h2.astype(jnp.bfloat16), w3_ref[...],
                preferred_element_type=jnp.float32)
    out_ref[...] = (o + b3_ref[...]).astype(out_ref.dtype)


def prepare_actor_params(params, n_actions):
    """One-time parameter prep (call once, reuse for every forward step).

    Casts weights to bf16 and pads the output layer to a 128-lane-dense slab,
    so the per-step forward performs no per-call weight cast/pad XLA ops.
    """
    a_pad = _round_up(max(n_actions, 128), 128)
    return {
        "w1": params["w1"].astype(jnp.bfloat16),
        "b1": params["b1"].astype(jnp.float32),
        "w2": params["w2"].astype(jnp.bfloat16),
        "b2": params["b2"].astype(jnp.float32),
        "w3": jnp.pad(params["w3"],
                      ((0, 0), (0, a_pad - n_actions))).astype(jnp.bfloat16),
        "b3": jnp.pad(params["b3"].astype(jnp.float32),
                      ((0, 0), (0, a_pad - n_actions))),
        "n_actions": n_actions,
    }


def actor_network_forward(obs, prepped):
    """Fused forward pass of ActorNetwork.

    obs:     (batch, obs_dim) array (treated like obs.float())
    prepped: output of prepare_actor_params (bf16 weights, padded layer 3)
    returns  (batch, n_actions) float32 logits
    """
    batch, obs_dim = obs.shape
    w1, b1 = prepped["w1"], prepped["b1"]
    w2, b2 = prepped["w2"], prepped["b2"]
    w3, b3 = prepped["w3"], prepped["b3"]
    n_actions = prepped["n_actions"]
    hidden = w1.shape[1]
    a_pad = w3.shape[1]

    vmem_limit, tile_cap = _vmem_budget()

    # Batch tile: guarantee >= 2 grid steps for non-trivial batches so both
    # v7x TensorCores get work; cap at tile_cap (larger on 128 MiB-VMEM
    # v5e/v6e) to amortize the ~0.35 us/step grid overhead.
    if batch >= 64:
        tb = min(tile_cap, _round_up(pl.cdiv(batch, 2), 16))
    else:
        tb = _round_up(batch, 8)
    batch_pad = _round_up(batch, tb)
    grid = (batch_pad // tb,)

    obs_p = obs.astype(jnp.float32)
    if batch_pad != batch:
        obs_p = jnp.pad(obs_p, ((0, batch_pad - batch), (0, 0)))

    # Weights/biases: full block, constant index_map, single-buffered ->
    # resident in VMEM across all grid steps (no re-DMA, no double buffer).
    resident = lambda a: pl.BlockSpec(a.shape, lambda i: (0,) * a.ndim,
                                      pipeline_mode=pl.Buffered(1))

    # TODO(synk): for very large hidden widths whose bf16 weights approach the
    # v7x VMEM budget, add a K-tiled "arbitrary" grid axis with an f32
    # accumulator scratch instead of keeping all weights resident.

    flops = 2 * batch_pad * (obs_dim * hidden + hidden * hidden + hidden * a_pad)
    bytes_accessed = (obs_p.size * 4                        # f32 obs in
                      + batch_pad * a_pad * 4               # f32 logits out
                      + (w1.size + w2.size + w3.size) * 2   # bf16 weights
                      + (b1.size + b2.size + b3.size) * 4)  # f32 biases

    out = pl.pallas_call(
        _actor_kernel,
        out_shape=jax.ShapeDtypeStruct((batch_pad, a_pad), jnp.float32),
        grid=grid,
        in_specs=[
            pl.BlockSpec((tb, obs_dim), lambda i: (i, 0)),  # streamed per tile
            resident(w1), resident(b1),
            resident(w2), resident(b2),
            resident(w3), resident(b3),
        ],
        out_specs=pl.BlockSpec((tb, a_pad), lambda i: (i, 0)),
        compiler_params=pltpu.CompilerParams(
            dimension_semantics=("parallel",),               # 2 TCs on v7x
            vmem_limit_bytes=vmem_limit,
        ),
        cost_estimate=pl.CostEstimate(
            flops=flops, transcendentals=0, bytes_accessed=bytes_accessed),
    )(obs_p, w1, b1, w2, b2, w3, b3)

    return out[:batch, :n_actions]


def init_params(key, obs_dim, hidden_dim_width, n_actions):
    """Deterministic synthetic params (PyTorch-Linear-like uniform init),
    stored as (in_features, out_features) in f32."""
    ks = jax.random.split(key, 6)

    def lin(kw, kb, fan_in, fan_out):
        bound = 1.0 / jnp.sqrt(fan_in)
        w = jax.random.uniform(kw, (fan_in, fan_out), jnp.float32, -bound, bound)
        b = jax.random.uniform(kb, (1, fan_out), jnp.float32, -bound, bound)
        return w, b

    w1, b1 = lin(ks[0], ks[1], obs_dim, hidden_dim_width)
    w2, b2 = lin(ks[2], ks[3], hidden_dim_width, hidden_dim_width)
    w3, b3 = lin(ks[4], ks[5], hidden_dim_width, n_actions)
    return {"w1": w1, "b1": b1, "w2": w2, "b2": b2, "w3": w3, "b3": b3}


if __name__ == "__main__":
    key = jax.random.PRNGKey(0)
    k_obs, k_params = jax.random.split(key)

    batch, obs_dim, hidden_dim_width, n_actions = 8, 16, 32, 8
    # TODO(synk): hidden_dim_width=32 / obs_dim=16 use a small fraction of the
    # 256-wide MXU; pad the model config toward 128 if the algorithm permits
    # (kernel handles any width).

    obs = jax.random.normal(k_obs, (batch, obs_dim), dtype=jnp.float32)
    params = init_params(k_params, obs_dim, hidden_dim_width, n_actions)

    # One-time prep (amortized across all RL steps), then the fused forward.
    prepped = prepare_actor_params(params, n_actions)
    out = actor_network_forward(obs, prepped)
    jax.block_until_ready(out)
    assert out.shape == (batch, n_actions)

    # Reference 1: same bf16-matmul / f32-accumulate path in pure JAX.
    bf = lambda a: a.astype(jnp.bfloat16)
    h1 = jnp.maximum(jnp.dot(bf(obs), bf(params["w1"]),
                             preferred_element_type=jnp.float32) + params["b1"], 0.0)
    h2 = jnp.maximum(jnp.dot(bf(h1), bf(params["w2"]),
                             preferred_element_type=jnp.float32) + params["b2"], 0.0)
    ref_bf16 = jnp.dot(bf(h2), bf(params["w3"]),
                       preferred_element_type=jnp.float32) + params["b3"]
    assert jnp.allclose(out, ref_bf16, atol=2e-3, rtol=2e-3)

    # Reference 2: original module semantics (all-f32 MLP) within bf16 precision.
    h1f = jnp.maximum(obs @ params["w1"] + params["b1"], 0.0)
    h2f = jnp.maximum(h1f @ params["w2"] + params["b2"], 0.0)
    ref_f32 = h2f @ params["w3"] + params["b3"]
    assert jnp.allclose(out, ref_f32, atol=5e-2, rtol=5e-2)

    print("KERNEL_OK")
</pallas_src>

<mosaic_0001>
module attributes {stable_mosaic.version = 11 : i64} {
  func.func @_actor_kernel(%arg0: i32, %arg1: memref<8x16xf32, #tpu.memory_space<vmem>>, %arg2: memref<16x32xbf16, #tpu.memory_space<vmem>>, %arg3: memref<1x32xf32, #tpu.memory_space<vmem>>, %arg4: memref<32x32xbf16, #tpu.memory_space<vmem>>, %arg5: memref<1x32xf32, #tpu.memory_space<vmem>>, %arg6: memref<32x128xbf16, #tpu.memory_space<vmem>>, %arg7: memref<1x128xf32, #tpu.memory_space<vmem>>, %arg8: memref<8x128xf32, #tpu.memory_space<vmem>>) attributes {dimension_semantics = [#tpu.dimension_semantics<parallel>], iteration_bounds = array<i64: 1>, scalar_prefetch = 0 : i64, scratch_operands = 0 : i64, tpu.core_type = #tpu.core_type<tc>, window_params = [{transform_indices = @transform_0, window_bounds = array<i64: 8, 16>}, {pipeline_mode = #tpu.pipeline_mode<synchronous>, transform_indices = @transform_1, window_bounds = array<i64: 16, 32>}, {pipeline_mode = #tpu.pipeline_mode<synchronous>, transform_indices = @transform_2, window_bounds = array<i64: 1, 32>}, {pipeline_mode = #tpu.pipeline_mode<synchronous>, transform_indices = @transform_3, window_bounds = array<i64: 32, 32>}, {pipeline_mode = #tpu.pipeline_mode<synchronous>, transform_indices = @transform_4, window_bounds = array<i64: 1, 32>}, {pipeline_mode = #tpu.pipeline_mode<synchronous>, transform_indices = @transform_5, window_bounds = array<i64: 32, 128>}, {pipeline_mode = #tpu.pipeline_mode<synchronous>, transform_indices = @transform_6, window_bounds = array<i64: 1, 128>}, {transform_indices = @transform_7, window_bounds = array<i64: 8, 128>}]} {
    %c0 = arith.constant 0 : index
    %c0_0 = arith.constant 0 : index
    %0 = vector.load %arg1[%c0, %c0_0] : memref<8x16xf32, #tpu.memory_space<vmem>>, vector<8x16xf32>
    %1 = arith.truncf %0 : vector<8x16xf32> to vector<8x16xbf16>
    %c0_1 = arith.constant 0 : index
    %c0_2 = arith.constant 0 : index
    %2 = vector.load %arg2[%c0_1, %c0_2] : memref<16x32xbf16, #tpu.memory_space<vmem>>, vector<16x32xbf16>
    %cst = arith.constant dense<0.000000e+00> : vector<8x32xf32>
    %3 = tpu.matmul %1, %2, %cst {dimension_numbers = #tpu.dot_dimension_numbers<[1], [0], [0], [1], [0, 0, 1, 1], [], []>} : vector<8x16xbf16>, vector<16x32xbf16>, vector<8x32xf32> -> vector<8x32xf32>
    %c0_3 = arith.constant 0 : index
    %c0_4 = arith.constant 0 : index
    %4 = vector.load %arg3[%c0_3, %c0_4] : memref<1x32xf32, #tpu.memory_space<vmem>>, vector<1x32xf32>
    %5 = vector.broadcast %4 : vector<1x32xf32> to vector<8x32xf32>
    %6 = arith.addf %3, %5 : vector<8x32xf32>
    %cst_5 = arith.constant 0.000000e+00 : f32
    %7 = vector.broadcast %cst_5 : f32 to vector<8x32xf32>
    %8 = arith.maximumf %6, %7 : vector<8x32xf32>
    %9 = arith.truncf %8 : vector<8x32xf32> to vector<8x32xbf16>
    %c0_6 = arith.constant 0 : index
    %c0_7 = arith.constant 0 : index
    %10 = vector.load %arg4[%c0_6, %c0_7] : memref<32x32xbf16, #tpu.memory_space<vmem>>, vector<32x32xbf16>
    %cst_8 = arith.constant dense<0.000000e+00> : vector<8x32xf32>
    %11 = tpu.matmul %9, %10, %cst_8 {dimension_numbers = #tpu.dot_dimension_numbers<[1], [0], [0], [1], [0, 0, 1, 1], [], []>} : vector<8x32xbf16>, vector<32x32xbf16>, vector<8x32xf32> -> vector<8x32xf32>
    %c0_9 = arith.constant 0 : index
    %c0_10 = arith.constant 0 : index
    %12 = vector.load %arg5[%c0_9, %c0_10] : memref<1x32xf32, #tpu.memory_space<vmem>>, vector<1x32xf32>
    %13 = vector.broadcast %12 : vector<1x32xf32> to vector<8x32xf32>
    %14 = arith.addf %11, %13 : vector<8x32xf32>
    %cst_11 = arith.constant 0.000000e+00 : f32
    %15 = vector.broadcast %cst_11 : f32 to vector<8x32xf32>
    %16 = arith.maximumf %14, %15 : vector<8x32xf32>
    %17 = arith.truncf %16 : vector<8x32xf32> to vector<8x32xbf16>
    %c0_12 = arith.constant 0 : index
    %c0_13 = arith.constant 0 : index
    %18 = vector.load %arg6[%c0_12, %c0_13] : memref<32x128xbf16, #tpu.memory_space<vmem>>, vector<32x128xbf16>
    %cst_14 = arith.constant dense<0.000000e+00> : vector<8x128xf32>
    %19 = tpu.matmul %17, %18, %cst_14 {dimension_numbers = #tpu.dot_dimension_numbers<[1], [0], [0], [1], [0, 0, 1, 1], [], []>} : vector<8x32xbf16>, vector<32x128xbf16>, vector<8x128xf32> -> vector<8x128xf32>
    %c0_15 = arith.constant 0 : index
    %c0_16 = arith.constant 0 : index
    %20 = vector.load %arg7[%c0_15, %c0_16] : memref<1x128xf32, #tpu.memory_space<vmem>>, vector<1x128xf32>
    %21 = vector.broadcast %20 : vector<1x128xf32> to vector<8x128xf32>
    %22 = arith.addf %19, %21 : vector<8x128xf32>
    %c0_17 = arith.constant 0 : index
    %c0_18 = arith.constant 0 : index
    %23 = vector.load %arg8[%c0_17, %c0_18] : memref<8x128xf32, #tpu.memory_space<vmem>>, vector<8x128xf32>
    tpu.vector_store %arg8[%c0_17, %c0_18], %22 {strides = array<i32>} : memref<8x128xf32, #tpu.memory_space<vmem>>, vector<8x128xf32>,
    return
  }
  func.func @transform_0(%arg0: i32) -> (i32, i32) {
    %c0_i32 = arith.constant 0 : i32
    %c0_i32_0 = arith.constant 0 : i32
    return %arg0, %c0_i32 : i32, i32
  }
  func.func @transform_1(%arg0: i32) -> (i32, i32) {
    %c0_i32 = arith.constant 0 : i32
    %c0_i32_0 = arith.constant 0 : i32
    %c0_i32_1 = arith.constant 0 : i32
    return %c0_i32, %c0_i32_0 : i32, i32
  }
  func.func @transform_2(%arg0: i32) -> (i32, i32) {
    %c0_i32 = arith.constant 0 : i32
    %c0_i32_0 = arith.constant 0 : i32
    %c0_i32_1 = arith.constant 0 : i32
    return %c0_i32, %c0_i32_0 : i32, i32
  }
  func.func @transform_3(%arg0: i32) -> (i32, i32) {
    %c0_i32 = arith.constant 0 : i32
    %c0_i32_0 = arith.constant 0 : i32
    %c0_i32_1 = arith.constant 0 : i32
    return %c0_i32, %c0_i32_0 : i32, i32
  }
  func.func @transform_4(%arg0: i32) -> (i32, i32) {
    %c0_i32 = arith.constant 0 : i32
    %c0_i32_0 = arith.constant 0 : i32
    %c0_i32_1 = arith.constant 0 : i32
    return %c0_i32, %c0_i32_0 : i32, i32
  }
  func.func @transform_5(%arg0: i32) -> (i32, i32) {
    %c0_i32 = arith.constant 0 : i32
    %c0_i32_0 = arith.constant 0 : i32
    %c0_i32_1 = arith.constant 0 : i32
    return %c0_i32, %c0_i32_0 : i32, i32
  }
  func.func @transform_6(%arg0: i32) -> (i32, i32) {
    %c0_i32 = arith.constant 0 : i32
    %c0_i32_0 = arith.constant 0 : i32
    %c0_i32_1 = arith.constant 0 : i32
    return %c0_i32, %c0_i32_0 : i32, i32
  }
  func.func @transform_7(%arg0: i32) -> (i32, i32) {
    %c0_i32 = arith.constant 0 : i32
    %c0_i32_0 = arith.constant 0 : i32
    return %arg0, %c0_i32 : i32, i32
  }
}

</mosaic_0001>

<bundles_post_ra>
// kernel: tpu_custom_call.1
= control target key start
LH: loop header
LB: loop body
LE: loop exit
PB: predicated region body
PF: predicated region fallthrough
CT: control target
= control target key end

     0   :  { %12 = vsyncpa [#allocation3], 0  ;;  %s542_s0 = inlined_call_operand.hbm [shape: f32[8,16], index: 0, kind: input, shape index: {}]   ;;  %s543_s1 = inlined_call_operand.hbm [shape: bf16[16,32], index: 1, kind: input, shape index: {}]   ;;  %s544_s2 = inlined_call_operand.vmem [shape: f32[1,32], index: 2, kind: input, shape index: {}]   ;;  %s545_s3 = inlined_call_operand.hbm [shape: bf16[32,32], index: 3, kind: input, shape index: {}]   ;;  %s546_s4 = inlined_call_operand.vmem [shape: f32[1,32], index: 4, kind: input, shape index: {}]   ;;  %s547_s5 = inlined_call_operand.hbm [shape: bf16[32,128], index: 5, kind: input, shape index: {}]   ;;  %s548_s6 = inlined_call_operand.vmem [shape: f32[1,128], index: 6, kind: input, shape index: {}]   ;;  %s549_s7 = inlined_call_operand.hbm [shape: f32[8,128], index: 7, kind: output, shape index: {}]  }
   0x1   :  { %13 = vsyncpa [#allocation6], 0 }
   0x2   :  { %14 = vsyncpa [#allocation9], 0 }
   0x3   :  { %15 = vsyncpa [#allocation4], 0  ;;  %s460_s24 = smov [#allocation5]  }
   0x4   :  { %s31_s25 = sshll.u32 %s460_s24, 4  ;;  %s32_s25 = int_to_ptr.vmem [resolvable:$true] %s31_s25 }
   0x5   :  { %s360_s26 = scalar_lea.vmem %s32_s25, 128  ;;  %p365_p1 = scmp.lt.s32.totalorder %s32_s25, %s32_s25 }
   0x6   :  { %p361_p0 = scmp.ne.s32.totalorder %s32_s25, %s360_s26  ;;  %p366_p2 = scmp.lt.s32.totalorder %s360_s26, %s360_s26 }
   0x8   :  { %p367_p3 = por %p366_p2, %p365_p1 }
   0xa   :  { %p368_p4 = pnand %p367_p3, %p361_p0 }
   0xc   :  { %371 = shalt.err (!%p368_p4)
}
   0xd   :  { %s461_s27 = smov 64   ;;  %s462_s28 = smov 4  }
   0xe   :  { %37 = dma.hbm_to_vmem [thread:$0]  %s543_s1, 128, %s32_s25, [#allocation6], %s461_s27, %s461_s27, %s462_s28  }
   0xf   :  { %s463_s8 = smov [#allocation2]   ;;  %s464_s10 = smov [#allocation7]  }
  0x10   :  { %s22_s9 = sshll.u32 %s463_s8, 4  ;;  %s45_s11 = sshll.u32 %s464_s10, 4  ;;  %s23_s9 = int_to_ptr.vmem [resolvable:$true] %s22_s9  ;;  %s46_s11 = int_to_ptr.vmem [resolvable:$true] %s45_s11 }
  0x11   :  { %s380_s12 = scalar_lea.vmem %s23_s9, 128  ;;  %p385_p6 = scmp.lt.s32.totalorder %s23_s9, %s23_s9 }
  0x12   :  { %p381_p5 = scmp.ne.s32.totalorder %s23_s9, %s380_s12  ;;  %p386_p7 = scmp.lt.s32.totalorder %s380_s12, %s380_s12 }
  0x14   :  { %p387_p8 = por %p386_p7, %p385_p6 }
  0x16   :  { %p388_p9 = pnand %p387_p8, %p381_p5 }
  0x18   :  { %391 = shalt.err (!%p388_p9)
}
  0x19   :  { %25 = dma.hbm_to_vmem [thread:$0]  %s542_s0, 128, %s23_s9, [#allocation3]  }
  0x1a   :  { %s400_s15 = scalar_lea.vmem %s46_s11, 256  ;;  %p405_p11 = scmp.lt.s32.totalorder %s46_s11, %s46_s11 }
  0x1b   :  { %p401_p10 = scmp.ne.s32.totalorder %s46_s11, %s400_s15  ;;  %p406_p12 = scmp.lt.s32.totalorder %s400_s15, %s400_s15 }
  0x1d   :  { %p407_p13 = por %p406_p12, %p405_p11 }
  0x1f   :  { %p408_p0 = pnand %p407_p13, %p401_p10 }
  0x21   :  { %411 = shalt.err (!%p408_p0)
}
  0x22   :  { %51 = dma.hbm_to_vmem [thread:$0]  %s545_s3, 256, %s46_s11, [#allocation6], %s461_s27, %s461_s27, %s462_s28  }
  0x23   :  { %s465_s17 = smov [#allocation8]  }
  0x24   :  { %s59_s18 = sshll.u32 %s465_s17, 4  ;;  %s60_s18 = int_to_ptr.vmem [resolvable:$true] %s59_s18 }
  0x25   :  { %s420_s19 = scalar_lea.vmem %s60_s18, 256  ;;  %p425_p2 = scmp.lt.s32.totalorder %s60_s18, %s60_s18 }
  0x26   :  { %p421_p1 = scmp.ne.s32.totalorder %s60_s18, %s420_s19  ;;  %p426_p3 = scmp.lt.s32.totalorder %s420_s19, %s420_s19 }
  0x28   :  { %p427_p4 = por %p426_p3, %p425_p2 }
  0x2a   :  { %p428_p5 = pnand %p427_p4, %p421_p1 }
  0x2c   :  { %431 = shalt.err (!%p428_p5)
}
  0x2d   :  { %65 = dma.hbm_to_vmem [thread:$0]  %s547_s5, 256, %s60_s18, [#allocation9], %s461_s27, %s461_s27, %s462_s28  }
  0x2e   :  { %452 = dma.done.wait [#allocation3], 128  }
  0x2f   :  { %453 = vsyncadd [#allocation3], 4294967168 }
  0x30   :  { %454 = dma.done.wait [#allocation6], 384  }
  0x31   :  { %455 = vsyncadd [#allocation6], 4294966912 }
  0x32   :  { %456 = dma.done.wait [#allocation9], 256  }
  0x33   :  { %457 = vsyncadd [#allocation9], 4294967040  ;;  %v466_v0 = vmov 0.0   ;;  %vm467_vm0 = vmmov 0   ;;  %v347_v1 = vld [vmem:[#allocation5] sm:$0xff]   ;;  %v81_v2 = vld [vmem:[#allocation2] sm:$0xff] }
  0x34   :  { %316 = vmatprep.subr.bf16.mxu0 %v466_v0  ;;  %318 = vmatprep.mubr.msk.bf16.mxu0 %vm467_vm0, %v466_v0  ;;  %vm98_vm1 = vcmask 130048   ;;  %v82_v3 = vpack.c.bf16 %v81_v2, %v81_v2  ;;  %v348_v4 = vld [vmem:[#allocation7 + $0x8] sm:$0xff]   ;;  %v349_v5 = vld [vmem:[#allocation7] sm:$0xff]   ;;  %v350_v6 = vld [vmem:[#allocation8 + $0x8] sm:$0xff]   ;;  %vm167_vm2 = vcmask 261120   ;;  %s468_s24 = smov [#allocation10]  }
  0x35   :  { %322 = vmatprep.subr.bf16.mxu1 %v466_v0  ;;  %326 = vmatprep.mubr.msk.bf16.mxu1 %vm467_vm0, %v466_v0  ;;  %v297_v7 = vld [vmem:[%s544_s2] ss:$0 sm:$0xff]  ;;  %s286_s25 = sshll.u32 %s468_s24, 4  ;;  %s287_s25 = int_to_ptr.vmem [resolvable:$true] %s286_s25 }
  0x36   :  { %317 = vmatpush3.bf16.msra.mxu0 %v347_v1  ;;  %323 = vmatpush3.bf16.msra.mxu1 %v348_v4  ;;  %v351_v15 = vld [vmem:[#allocation8] sm:$0xff]   ;;  %p437_p7 = scmp.lt.s32.totalorder %s287_s25, %s287_s25 }
  0x37   :  { %330 = vmatprep.subr.bf16.mxu0 %v466_v0  ;;  %324 = vmatprep.subr.bf16.mxu1 %v466_v0  ;;  %v300_v16 = vld [vmem:[%s546_s4] ss:$0 sm:$0xff]  ;;  %s432_s4 = scalar_lea.vmem %s287_s25, 128 }
  0x38   :  { %v304_v24 = vld [vmem:[%s548_s6] ss:$0 sm:$0xff]  ;;  %p433_p6 = scmp.ne.s32.totalorder %s287_s25, %s432_s4  ;;  %p438_p8 = scmp.lt.s32.totalorder %s432_s4, %s432_s4 }
  0x39   :  { %319 = vmatmul.mubr.msk.bf16.vlgmr.msra.gmra.mxu0 %vm98_vm1, %v82_v3 }
  0x3a   :  { %334 = vmatprep.mubr.msk.bf16.mxu0 %vm467_vm0, %v466_v0  ;;  %325 = vmatpush3.bf16.msra.mxu1 %v349_v5  ;;  %p439_p9 = por %p438_p8, %p437_p7 }
  0x3b   :  { %331 = vmatpush3.bf16.msra.mxu0 %v350_v6 }
  0x3c   :  { %332 = vmatprep.subr.bf16.mxu0 %v466_v0  ;;  %p440_p10 = pnand %p439_p9, %p433_p6 }
  0x3f   :  { %333 = vmatpush3.bf16.msra.mxu0 %v351_v15 }
  0xf9   :  { %v136_v8 = vpop.f32.mrf.mxu0 }
  0xfa   :  { %v137_v9 = vadd.f32 %v297_v7, %v136_v8 }
  0xfb   :  { %v320_v10 = vpop.f32.mrf.mxu0 }
  0xfc   :  { %v142_v11 = vmax.f32 %v137_v9, 0.0 }
  0xfd   :  { %v139_v12 = vpop.f32.mrf.mxu0 }
  0xfe   :  { %v143_v13 = vpack.c.bf16 %v142_v11, %v142_v11 }
  0xff   :  { %v321_v14 = vpop.f32.mrf.mxu0 }
 0x100   :  { %327 = vmatmul.mubr.msk.bf16.vlgmr.msra.gmra.mxu1 %vm167_vm2, %v143_v13 }
 0x1c0   :  { %v205_v17 = vpop.f32.mrf.mxu1 }
 0x1c1   :  { %v206_v18 = vadd.f32 %v300_v16, %v205_v17 }
 0x1c2   :  { %v328_v19 = vpop.f32.mrf.mxu1 }
 0x1c3   :  { %v211_v20 = vmax.f32 %v206_v18, 0.0 }
 0x1c4   :  { %v208_v21 = vpop.f32.mrf.mxu1 }
 0x1c5   :  { %v212_v22 = vpack.c.bf16 %v211_v20, %v211_v20 }
 0x1c6   :  { %v329_v23 = vpop.f32.mrf.mxu1 }
 0x1c7   :  { %335 = vmatmul.mubr.msk.bf16.vlgmr.msra.gmra.mxu0 %vm167_vm2, %v212_v22 }
 0x287   :  { %v273_v25 = vpop.f32.mrf.mxu0 }
 0x288   :  { %v274_v26 = vadd.f32 %v304_v24, %v273_v25 }
 0x289   :  { %v336_v27 = vpop.f32.mrf.mxu0 }
 0x28a   :  { %279 = vst [vmem:[#allocation10] sm:$0xff] %v274_v26 }
 0x28b   :  { %v276_v28 = vpop.f32.mrf.mxu0 }
 0x28c   :  { %443 = shalt.err (!%p440_p10)
}
 0x28d   :  { %289 = dma.vmem_to_hbm [thread:$0]  %s287_s25, 128, %s549_s7, [#allocation4]   ;;  %v337_v29 = vpop.f32.mrf.mxu0 }
 0x28e   :  { %458 = dma.done.wait [#allocation4], 128  }
 0x28f   :  { %459 = vsyncadd [#allocation4], 4294967168 }
 0x290   :  { %293 = vsyncpa [#allocation3], 1 }
 0x291   :  { %294 = vsyncpa [#allocation6], 1 }
 0x292   :  { %295 = vsyncpa [#allocation9], 1 }
 0x293   :  { %296 = vsyncpa [#allocation4], 1 }

</bundles_post_ra>
